<compile_context>
chip_gen: v6e
topology: v6e:2x2x1
jax: 0.10.0
libtpu: 0.0.40
codegen_flags: <defaults>
</compile_context>

<pallas_src>
import functools

import jax
import jax.numpy as jnp
from jax import lax
from jax.experimental import pallas as pl
from jax.experimental.pallas import tpu as pltpu


def _round_up(x, m):
    return ((x + m - 1) // m) * m


def _pick_tile(n_pad, preferred):
    for t in preferred:
        if t <= n_pad and n_pad % t == 0:
            return t
    return n_pad  # n_pad is always a multiple of 128


# ----------------------- pass 1: QKV projection (1x1 convs) -----------------

def _qkv_proj_kernel(x_ref, wq_ref, wk_ref, wv_ref, bq_ref, bk_ref, bv_ref,
                     q_ref, k_ref, v_ref):
    # bf16 MXU operands, f32 accumulation. Three minimal-width dots (no padded
    # output columns); x tile is loaded once and reused for all three.
    x = x_ref[0].astype(jnp.bfloat16)                                # (TN, C)
    q = jnp.dot(x, wq_ref[...], preferred_element_type=jnp.float32) + bq_ref[...]
    k = jnp.dot(x, wk_ref[...], preferred_element_type=jnp.float32) + bk_ref[...]
    v = jnp.dot(x, wv_ref[...], preferred_element_type=jnp.float32) + bv_ref[...]
    q_ref[0] = q.astype(q_ref.dtype)
    k_ref[0] = k.astype(k_ref.dtype)
    v_ref[0] = v.astype(v_ref.dtype)


# ------------------ pass 2: flash attention + residual add ------------------

def _flash_attn_kernel(q_ref, k_ref, v_ref, x_ref, gamma_ref, o_ref,
                       m_scr, l_scr, acc_scr, *, n_real, tk, needs_mask):
    ki = pl.program_id(2)
    nk = pl.num_programs(2)

    @pl.when(ki == 0)
    def _():
        m_scr[...] = jnp.full(m_scr.shape, -jnp.inf, m_scr.dtype)
        l_scr[...] = jnp.zeros(l_scr.shape, l_scr.dtype)
        acc_scr[...] = jnp.zeros(acc_scr.shape, acc_scr.dtype)

    q = q_ref[0]                        # (TQ, Cq) bf16
    k = k_ref[0]                        # (TK, Cq) bf16
    v = v_ref[0]                        # (TK, C)  bf16

    # energy tile: contract last axes of q and k (A.B^T form, f32 accumulate)
    s = lax.dot_general(q, k, (((1,), (1,)), ((), ())),
                        preferred_element_type=jnp.float32)          # (TQ, TK)

    if needs_mask:
        # Only traced when N was padded up to a 128 multiple. Safe to use
        # -1e30 (not -inf): padding < 128 <= tk so a KV tile is never fully
        # masked.
        col = ki * tk + lax.broadcasted_iota(jnp.int32, s.shape, 1)
        s = jnp.where(col < n_real, s, -1e30)

    # online softmax (f32 statistics)
    m_prev = m_scr[...]
    m_new = jnp.maximum(m_prev, jnp.max(s, axis=-1, keepdims=True))
    alpha = jnp.exp(m_prev - m_new)
    p = jnp.exp(s - m_new)
    l_scr[...] = alpha * l_scr[...] + jnp.sum(p, axis=-1, keepdims=True)
    acc_scr[...] = alpha * acc_scr[...] + jnp.dot(
        p.astype(v.dtype), v, preferred_element_type=jnp.float32)
    m_scr[...] = m_new

    @pl.when(ki == nk - 1)
    def _():
        gamma = gamma_ref[0]                                         # SMEM scalar
        out = acc_scr[...] * pl.reciprocal(l_scr[...], approx=True)
        o_ref[0] = (x_ref[0] + gamma * out).astype(o_ref.dtype)


# --------------------------------- wrapper ----------------------------------

def self_attention_pallas(x_nchw, params, *, tq=None, tk=None, tn=None):
    """x_nchw: (B, C, H, W) float32. Returns (B, C, H, W)."""
    B, C, H, W = x_nchw.shape
    N = H * W
    Cq = params["wq"].shape[0]          # = C // 8

    n_pad = _round_up(N, 128)

    # ---- generation-aware VMEM budget & tile selection ----
    try:
        info = pltpu.get_tpu_info()
        vmem_cap = int(getattr(info, "vmem_capacity_bytes", 64 << 20))
    except Exception:
        vmem_cap = 64 << 20
    big_vmem = vmem_cap >= (100 << 20)            # v5e/v6e: 128 MiB per TC
    vmem_clamp = min(int(0.75 * vmem_cap), 100 << 20)   # ~96 MiB v5e/v6e, ~48 MiB v7x

    seq_pref = (1024, 512, 256, 128) if big_vmem else (512, 256, 128)
    tq = tq or _pick_tile(n_pad, seq_pref)
    tk = tk or _pick_tile(n_pad, seq_pref)
    tn = tn or _pick_tile(n_pad, (1024, 512, 256, 128))

    # layout: NCHW -> (B, N, C); only the row (spatial) dim is padded.
    # TODO(synk): consume x as (B, C, N) inside pass 1 / pass 2 to remove
    # these XLA-side transpose round trips.
    x_bnc = jnp.transpose(x_nchw, (0, 2, 3, 1)).reshape(B, N, C)
    x_bnc = x_bnc.astype(jnp.float32)
    if n_pad != N:
        x_bnc = jnp.pad(x_bnc, ((0, 0), (0, n_pad - N), (0, 0)))

    # pre-transposed bf16 weights, f32 biases
    wq_t = jnp.asarray(params["wq"]).T.astype(jnp.bfloat16)   # (C, Cq)
    wk_t = jnp.asarray(params["wk"]).T.astype(jnp.bfloat16)   # (C, Cq)
    wv_t = jnp.asarray(params["wv"]).T.astype(jnp.bfloat16)   # (C, C)
    bq = jnp.asarray(params["bq"]).reshape(1, Cq).astype(jnp.float32)
    bk = jnp.asarray(params["bk"]).reshape(1, Cq).astype(jnp.float32)
    bv = jnp.asarray(params["bv"]).reshape(1, C).astype(jnp.float32)

    # ---- pass 1: bf16 QKV projection, q/k/v stored bf16, unpadded widths ----
    proj_need = (2 * (tn * C * 4 + 2 * tn * Cq * 2 + tn * C * 2)   # x + q/k/v tiles
                 + 2 * ((2 * Cq + C) * C) + 4 * (2 * Cq + C)        # weights + bias
                 + 4 * tn * max(C, Cq) * 4)                         # in-kernel temps
    proj_limit = int(min(vmem_clamp, max(32 << 20, 2 * proj_need)))

    q_b, k_b, v_b = pl.pallas_call(
        _qkv_proj_kernel,
        out_shape=(
            jax.ShapeDtypeStruct((B, n_pad, Cq), jnp.bfloat16),
            jax.ShapeDtypeStruct((B, n_pad, Cq), jnp.bfloat16),
            jax.ShapeDtypeStruct((B, n_pad, C), jnp.bfloat16),
        ),
        grid_spec=pltpu.PrefetchScalarGridSpec(
            num_scalar_prefetch=0,
            grid=(B, n_pad // tn),
            in_specs=[
                pl.BlockSpec((1, tn, C), lambda b, i: (b, i, 0)),   # x
                pl.BlockSpec((C, Cq), lambda b, i: (0, 0)),         # wq^T
                pl.BlockSpec((C, Cq), lambda b, i: (0, 0)),         # wk^T
                pl.BlockSpec((C, C), lambda b, i: (0, 0)),          # wv^T
                pl.BlockSpec((1, Cq), lambda b, i: (0, 0)),         # bq
                pl.BlockSpec((1, Cq), lambda b, i: (0, 0)),         # bk
                pl.BlockSpec((1, C), lambda b, i: (0, 0)),          # bv
            ],
            out_specs=(
                pl.BlockSpec((1, tn, Cq), lambda b, i: (b, i, 0)),  # q
                pl.BlockSpec((1, tn, Cq), lambda b, i: (b, i, 0)),  # k
                pl.BlockSpec((1, tn, C), lambda b, i: (b, i, 0)),   # v
            ),
        ),
        compiler_params=pltpu.CompilerParams(
            dimension_semantics=("parallel", "parallel"),
            vmem_limit_bytes=proj_limit,
        ),
    )(x_bnc, wq_t, wk_t, wv_t, bq, bk, bv)

    # ---- pass 2: flash attention + gamma residual (unpadded C) ----
    gamma = jnp.asarray(params["gamma"]).reshape(1).astype(jnp.float32)
    flash_need = (2 * (tq * Cq * 2 + tk * Cq * 2 + tk * C * 2      # q,k,v tiles
                       + tq * C * 4 + tq * C * 4)                  # x residual + out
                  + tq * C * 4 + 2 * tq * 128 * 4                  # acc + m/l scratch
                  + 4 * tq * tk * 4)                               # s/p temporaries
    flash_limit = int(min(vmem_clamp, max(32 << 20, 2 * flash_need)))

    kernel = functools.partial(_flash_attn_kernel, n_real=N, tk=tk,
                               needs_mask=(n_pad != N))
    out_pad = pl.pallas_call(
        kernel,
        out_shape=jax.ShapeDtypeStruct((B, n_pad, C), jnp.float32),
        grid_spec=pltpu.PrefetchScalarGridSpec(
            num_scalar_prefetch=0,
            grid=(B, n_pad // tq, n_pad // tk),
            in_specs=[
                pl.BlockSpec((1, tq, Cq), lambda b, qi, ki: (b, qi, 0)),  # q
                pl.BlockSpec((1, tk, Cq), lambda b, qi, ki: (b, ki, 0)),  # k
                pl.BlockSpec((1, tk, C), lambda b, qi, ki: (b, ki, 0)),   # v
                pl.BlockSpec((1, tq, C), lambda b, qi, ki: (b, qi, 0)),   # x residual
                pl.BlockSpec(memory_space=pltpu.MemorySpace.SMEM),        # gamma
            ],
            out_specs=pl.BlockSpec((1, tq, C), lambda b, qi, ki: (b, qi, 0)),
            scratch_shapes=[
                pltpu.VMEM((tq, 1), jnp.float32),    # running max
                pltpu.VMEM((tq, 1), jnp.float32),    # running denom
                pltpu.VMEM((tq, C), jnp.float32),    # output accumulator
            ],
        ),
        compiler_params=pltpu.CompilerParams(
            dimension_semantics=("parallel", "parallel", "arbitrary"),
            vmem_limit_bytes=flash_limit,
        ),
    )(q_b, k_b, v_b, x_bnc, gamma)

    # un-pad rows, layout back to NCHW
    y = out_pad[:, :N, :].reshape(B, H, W, C)
    return jnp.transpose(y, (0, 3, 1, 2))


# ------------------------------ pure-JAX ref ---------------------------------

def self_attention_ref(x_nchw, params):
    B, C, H, W = x_nchw.shape
    N = H * W
    x_bnc = jnp.transpose(x_nchw, (0, 2, 3, 1)).reshape(B, N, C)
    q = jnp.einsum("bnc,oc->bno", x_bnc, params["wq"]) + params["bq"]
    k = jnp.einsum("bnc,oc->bno", x_bnc, params["wk"]) + params["bk"]
    v = jnp.einsum("bnc,oc->bno", x_bnc, params["wv"]) + params["bv"]
    energy = jnp.einsum("bnc,bmc->bnm", q, k)
    attn = jax.nn.softmax(energy, axis=2)
    out = jnp.einsum("bnm,bmc->bnc", attn, v)
    y = x_bnc + params["gamma"][0] * out
    return jnp.transpose(y.reshape(B, H, W, C), (0, 3, 1, 2))


def init_params(key, in_dim):
    cq = in_dim // 8
    ks = jax.random.split(key, 6)
    scale = 1.0 / jnp.sqrt(in_dim)
    return {
        "wq": jax.random.normal(ks[0], (cq, in_dim), jnp.float32) * scale,
        "bq": jax.random.normal(ks[1], (cq,), jnp.float32) * scale,
        "wk": jax.random.normal(ks[2], (cq, in_dim), jnp.float32) * scale,
        "bk": jax.random.normal(ks[3], (cq,), jnp.float32) * scale,
        "wv": jax.random.normal(ks[4], (in_dim, in_dim), jnp.float32) * scale,
        "bv": jax.random.normal(ks[5], (in_dim,), jnp.float32) * scale,
        # nn.Parameter(torch.zeros([1])) -> gamma starts at 0
        "gamma": jnp.zeros((1,), jnp.float32),
    }


if __name__ == "__main__":
    key = jax.random.PRNGKey(0)
    kx, kp = jax.random.split(key)

    B, C, H, W = 2, 32, 16, 16           # in_dim=32 -> C//8 = 4, N = 256
    x = jax.random.normal(kx, (B, C, H, W), jnp.float32)
    params = init_params(kp, C)

    # gamma = 0 (module init): output must equal input (tight tolerance).
    y0 = jax.block_until_ready(self_attention_pallas(x, params))
    r0 = self_attention_ref(x, params)
    assert jnp.allclose(y0, r0, atol=1e-5, rtol=1e-5), \
        float(jnp.max(jnp.abs(y0 - r0)))

    # nonzero gamma exercises the attention path; bf16 MXU operands -> looser tol.
    params_nz = dict(params, gamma=jnp.array([0.5], jnp.float32))
    y1 = jax.block_until_ready(self_attention_pallas(x, params_nz))
    r1 = self_attention_ref(x, params_nz)
    assert jnp.allclose(y1, r1, atol=2e-2, rtol=2e-2), \
        float(jnp.max(jnp.abs(y1 - r1)))

    print("KERNEL_OK")
</pallas_src>

<mosaic_0001>
module attributes {stable_mosaic.version = 11 : i64} {
  func.func @_qkv_proj_kernel(%arg0: i32, %arg1: i32, %arg2: memref<1x256x32xf32, #tpu.memory_space<vmem>>, %arg3: memref<32x4xbf16, #tpu.memory_space<vmem>>, %arg4: memref<32x4xbf16, #tpu.memory_space<vmem>>, %arg5: memref<32x32xbf16, #tpu.memory_space<vmem>>, %arg6: memref<1x4xf32, #tpu.memory_space<vmem>>, %arg7: memref<1x4xf32, #tpu.memory_space<vmem>>, %arg8: memref<1x32xf32, #tpu.memory_space<vmem>>, %arg9: memref<1x256x4xbf16, #tpu.memory_space<vmem>>, %arg10: memref<1x256x4xbf16, #tpu.memory_space<vmem>>, %arg11: memref<1x256x32xbf16, #tpu.memory_space<vmem>>) attributes {dimension_semantics = [#tpu.dimension_semantics<parallel>, #tpu.dimension_semantics<parallel>], iteration_bounds = array<i64: 2, 1>, scalar_prefetch = 0 : i64, scratch_operands = 0 : i64, tpu.core_type = #tpu.core_type<tc>, window_params = [{transform_indices = @transform_0, window_bounds = array<i64: 1, 256, 32>}, {pipeline_mode = #tpu.pipeline_mode<synchronous>, transform_indices = @transform_1, window_bounds = array<i64: 32, 4>}, {pipeline_mode = #tpu.pipeline_mode<synchronous>, transform_indices = @transform_2, window_bounds = array<i64: 32, 4>}, {pipeline_mode = #tpu.pipeline_mode<synchronous>, transform_indices = @transform_3, window_bounds = array<i64: 32, 32>}, {pipeline_mode = #tpu.pipeline_mode<synchronous>, transform_indices = @transform_4, window_bounds = array<i64: 1, 4>}, {pipeline_mode = #tpu.pipeline_mode<synchronous>, transform_indices = @transform_5, window_bounds = array<i64: 1, 4>}, {pipeline_mode = #tpu.pipeline_mode<synchronous>, transform_indices = @transform_6, window_bounds = array<i64: 1, 32>}, {transform_indices = @transform_7, window_bounds = array<i64: 1, 256, 4>}, {transform_indices = @transform_8, window_bounds = array<i64: 1, 256, 4>}, {transform_indices = @transform_9, window_bounds = array<i64: 1, 256, 32>}]} {
    %c0 = arith.constant 0 : index
    %c0_0 = arith.constant 0 : index
    %c0_1 = arith.constant 0 : index
    %0 = vector.load %arg2[%c0, %c0_0, %c0_1] : memref<1x256x32xf32, #tpu.memory_space<vmem>>, vector<1x256x32xf32>
    %1 = vector.shape_cast %0 : vector<1x256x32xf32> to vector<256x32xf32>
    %2 = arith.truncf %1 : vector<256x32xf32> to vector<256x32xbf16>
    %c0_2 = arith.constant 0 : index
    %c0_3 = arith.constant 0 : index
    %3 = vector.load %arg3[%c0_2, %c0_3] : memref<32x4xbf16, #tpu.memory_space<vmem>>, vector<32x4xbf16>
    %cst = arith.constant dense<0.000000e+00> : vector<256x4xf32>
    %4 = tpu.matmul %2, %3, %cst {dimension_numbers = #tpu.dot_dimension_numbers<[1], [0], [0], [1], [0, 0, 1, 1], [], []>} : vector<256x32xbf16>, vector<32x4xbf16>, vector<256x4xf32> -> vector<256x4xf32>
    %c0_4 = arith.constant 0 : index
    %c0_5 = arith.constant 0 : index
    %5 = vector.load %arg6[%c0_4, %c0_5] : memref<1x4xf32, #tpu.memory_space<vmem>>, vector<1x4xf32>
    %6 = vector.broadcast %5 : vector<1x4xf32> to vector<256x4xf32>
    %7 = arith.addf %4, %6 : vector<256x4xf32>
    %c0_6 = arith.constant 0 : index
    %c0_7 = arith.constant 0 : index
    %8 = vector.load %arg4[%c0_6, %c0_7] : memref<32x4xbf16, #tpu.memory_space<vmem>>, vector<32x4xbf16>
    %cst_8 = arith.constant dense<0.000000e+00> : vector<256x4xf32>
    %9 = tpu.matmul %2, %8, %cst_8 {dimension_numbers = #tpu.dot_dimension_numbers<[1], [0], [0], [1], [0, 0, 1, 1], [], []>} : vector<256x32xbf16>, vector<32x4xbf16>, vector<256x4xf32> -> vector<256x4xf32>
    %c0_9 = arith.constant 0 : index
    %c0_10 = arith.constant 0 : index
    %10 = vector.load %arg7[%c0_9, %c0_10] : memref<1x4xf32, #tpu.memory_space<vmem>>, vector<1x4xf32>
    %11 = vector.broadcast %10 : vector<1x4xf32> to vector<256x4xf32>
    %12 = arith.addf %9, %11 : vector<256x4xf32>
    %c0_11 = arith.constant 0 : index
    %c0_12 = arith.constant 0 : index
    %13 = vector.load %arg5[%c0_11, %c0_12] : memref<32x32xbf16, #tpu.memory_space<vmem>>, vector<32x32xbf16>
    %cst_13 = arith.constant dense<0.000000e+00> : vector<256x32xf32>
    %14 = tpu.matmul %2, %13, %cst_13 {dimension_numbers = #tpu.dot_dimension_numbers<[1], [0], [0], [1], [0, 0, 1, 1], [], []>} : vector<256x32xbf16>, vector<32x32xbf16>, vector<256x32xf32> -> vector<256x32xf32>
    %c0_14 = arith.constant 0 : index
    %c0_15 = arith.constant 0 : index
    %15 = vector.load %arg8[%c0_14, %c0_15] : memref<1x32xf32, #tpu.memory_space<vmem>>, vector<1x32xf32>
    %16 = vector.broadcast %15 : vector<1x32xf32> to vector<256x32xf32>
    %17 = arith.addf %14, %16 : vector<256x32xf32>
    %18 = arith.truncf %7 : vector<256x4xf32> to vector<256x4xbf16>
    %c0_16 = arith.constant 0 : index
    %c0_17 = arith.constant 0 : index
    %c0_18 = arith.constant 0 : index
    %19 = vector.load %arg9[%c0_16, %c0_17, %c0_18] : memref<1x256x4xbf16, #tpu.memory_space<vmem>>, vector<1x256x4xbf16>
    %20 = vector.shape_cast %19 : vector<1x256x4xbf16> to vector<256x4xbf16>
    %21 = vector.shape_cast %18 : vector<256x4xbf16> to vector<1x256x4xbf16>
    tpu.vector_store %arg9[%c0_16, %c0_17, %c0_18], %21 {strides = array<i32>} : memref<1x256x4xbf16, #tpu.memory_space<vmem>>, vector<1x256x4xbf16>,
    %22 = arith.truncf %12 : vector<256x4xf32> to vector<256x4xbf16>
    %c0_19 = arith.constant 0 : index
    %c0_20 = arith.constant 0 : index
    %c0_21 = arith.constant 0 : index
    %23 = vector.load %arg10[%c0_19, %c0_20, %c0_21] : memref<1x256x4xbf16, #tpu.memory_space<vmem>>, vector<1x256x4xbf16>
    %24 = vector.shape_cast %23 : vector<1x256x4xbf16> to vector<256x4xbf16>
    %25 = vector.shape_cast %22 : vector<256x4xbf16> to vector<1x256x4xbf16>
    tpu.vector_store %arg10[%c0_19, %c0_20, %c0_21], %25 {strides = array<i32>} : memref<1x256x4xbf16, #tpu.memory_space<vmem>>, vector<1x256x4xbf16>,
    %26 = arith.truncf %17 : vector<256x32xf32> to vector<256x32xbf16>
    %c0_22 = arith.constant 0 : index
    %c0_23 = arith.constant 0 : index
    %c0_24 = arith.constant 0 : index
    %27 = vector.load %arg11[%c0_22, %c0_23, %c0_24] : memref<1x256x32xbf16, #tpu.memory_space<vmem>>, vector<1x256x32xbf16>
    %28 = vector.shape_cast %27 : vector<1x256x32xbf16> to vector<256x32xbf16>
    %29 = vector.shape_cast %26 : vector<256x32xbf16> to vector<1x256x32xbf16>
    tpu.vector_store %arg11[%c0_22, %c0_23, %c0_24], %29 {strides = array<i32>} : memref<1x256x32xbf16, #tpu.memory_space<vmem>>, vector<1x256x32xbf16>,
    return
  }
  func.func @transform_0(%arg0: i32, %arg1: i32) -> (i32, i32, i32) {
    %c0_i32 = arith.constant 0 : i32
    %c0_i32_0 = arith.constant 0 : i32
    return %arg0, %arg1, %c0_i32 : i32, i32, i32
  }
  func.func @transform_1(%arg0: i32, %arg1: i32) -> (i32, i32) {
    %c0_i32 = arith.constant 0 : i32
    %c0_i32_0 = arith.constant 0 : i32
    %c0_i32_1 = arith.constant 0 : i32
    return %c0_i32, %c0_i32_0 : i32, i32
  }
  func.func @transform_2(%arg0: i32, %arg1: i32) -> (i32, i32) {
    %c0_i32 = arith.constant 0 : i32
    %c0_i32_0 = arith.constant 0 : i32
    %c0_i32_1 = arith.constant 0 : i32
    return %c0_i32, %c0_i32_0 : i32, i32
  }
  func.func @transform_3(%arg0: i32, %arg1: i32) -> (i32, i32) {
    %c0_i32 = arith.constant 0 : i32
    %c0_i32_0 = arith.constant 0 : i32
    %c0_i32_1 = arith.constant 0 : i32
    return %c0_i32, %c0_i32_0 : i32, i32
  }
  func.func @transform_4(%arg0: i32, %arg1: i32) -> (i32, i32) {
    %c0_i32 = arith.constant 0 : i32
    %c0_i32_0 = arith.constant 0 : i32
    %c0_i32_1 = arith.constant 0 : i32
    return %c0_i32, %c0_i32_0 : i32, i32
  }
  func.func @transform_5(%arg0: i32, %arg1: i32) -> (i32, i32) {
    %c0_i32 = arith.constant 0 : i32
    %c0_i32_0 = arith.constant 0 : i32
    %c0_i32_1 = arith.constant 0 : i32
    return %c0_i32, %c0_i32_0 : i32, i32
  }
  func.func @transform_6(%arg0: i32, %arg1: i32) -> (i32, i32) {
    %c0_i32 = arith.constant 0 : i32
    %c0_i32_0 = arith.constant 0 : i32
    %c0_i32_1 = arith.constant 0 : i32
    return %c0_i32, %c0_i32_0 : i32, i32
  }
  func.func @transform_7(%arg0: i32, %arg1: i32) -> (i32, i32, i32) {
    %c0_i32 = arith.constant 0 : i32
    %c0_i32_0 = arith.constant 0 : i32
    return %arg0, %arg1, %c0_i32 : i32, i32, i32
  }
  func.func @transform_8(%arg0: i32, %arg1: i32) -> (i32, i32, i32) {
    %c0_i32 = arith.constant 0 : i32
    %c0_i32_0 = arith.constant 0 : i32
    return %arg0, %arg1, %c0_i32 : i32, i32, i32
  }
  func.func @transform_9(%arg0: i32, %arg1: i32) -> (i32, i32, i32) {
    %c0_i32 = arith.constant 0 : i32
    %c0_i32_0 = arith.constant 0 : i32
    return %arg0, %arg1, %c0_i32 : i32, i32, i32
  }
}

</mosaic_0001>

<bundles_post_ra>
// kernel: tpu_custom_call.1
= control target key start
LH: loop header
LB: loop body
LE: loop exit
PB: predicated region body
PF: predicated region fallthrough
CT: control target
= control target key end

     0   :  { %s2276_s30 = smov 0   ;;  %s2278_s10 = smov 0   ;;  %s2758_s0 = inlined_call_operand.vmem [shape: f32[2,256,32], index: 0, kind: input, shape index: {}]   ;;  %s2759_s1 = inlined_call_operand.vmem [shape: bf16[32,4], index: 1, kind: input, shape index: {}]   ;;  %s2760_s2 = inlined_call_operand.vmem [shape: bf16[32,4], index: 2, kind: input, shape index: {}]   ;;  %s2761_s3 = inlined_call_operand.vmem [shape: bf16[32,32], index: 3, kind: input, shape index: {}]   ;;  %s2762_s4 = inlined_call_operand.vmem [shape: f32[1,4], index: 4, kind: input, shape index: {}]   ;;  %s2763_s5 = inlined_call_operand.vmem [shape: f32[1,4], index: 5, kind: input, shape index: {}]   ;;  %s2764_s6 = inlined_call_operand.vmem [shape: f32[1,32], index: 6, kind: input, shape index: {}]   ;;  %s2765_s7 = inlined_call_operand.vmem [shape: bf16[2,256,4], index: 7, kind: output, shape index: {0}]   ;;  %s2766_s8 = inlined_call_operand.vmem [shape: bf16[2,256,4], index: 8, kind: output, shape index: {1}]   ;;  %s2767_s9 = inlined_call_operand.vmem [shape: bf16[2,256,32], index: 9, kind: output, shape index: {2}]  }
   0x1   :  { %s2280_s11 = smov 0  }
   0x2 LB: > { %s32_s12 = sadd.s32 1, %s2220_s10  ;;  %p1742_p0 = scmp.ge.s32.totalorder %s2224_s11, 1  ;;  %s2224_s11 = sphi %s2280_s11, %s20_s11   ;;  %s2220_s10 = sphi %s2278_s10, %s2769_s10   ;;  %s2216_s30 = sphi %s2276_s30, %s2768_s30  }
   0x3   : > { %p34_p1 = scmp.ge.s32.totalorder %s32_s12, 2  ;;  %p317_p2 = scmp.lt.s32.totalorder %s2224_s11, 3 }
   0x5   : > { %s2771_s12 = smov (%p34_p1, %s32_s12), 0  ;;  %p318_p3 = pnand %p1742_p0, %p317_p2 }
   0x6   : > { %p380_p4 = scmp.lt.s32.totalorder (!%p318_p3), %s2216_s30, 1 }
   0x7   : > { %321 = sbr.rel (%p318_p3) target bundleno = 314 (0x13a), region = 48 }
   0xc   : > { %v2196_v0 = vld [vmem:[%s2759_s1 + $0x8] sm:$0xff]   ;;  %v2197_v1 = vld [vmem:[%s2759_s1] sm:$0xff]   ;;  %s2773_s30 = smov (!%p380_p4, %s2216_s30), 1  ;;  %vm491_vm0 = vcmask 261120   ;;  %vm1197_vm1 = vcmask 27648   ;;  %vm1518_vm2 = vcmask 257024  }
   0xd   : > { %2060 = vmatprep.subr.bf16.mxu0 %v2196_v0  ;;  %2168 = vmatprep.subr.bf16.mxu1 %v2196_v0  ;;  %v2198_v2 = vld [vmem:[%s2760_s2 + $0x8] sm:$0xff]   ;;  %s1906_s19 = sshll.u32 %s2773_s30, 8  ;;  %v2200_v11 = vld [vmem:[%s2760_s2] sm:$0xff]   ;;  %s2431_s14 = sshll.u32 %s2773_s30, 7 }
   0xe   : > { %2061 = vmatpush3.bf16.msra.mxu0 %v2196_v0  ;;  %2170 = vmatpush3.bf16.msra.mxu1 %v2196_v0  ;;  %v2199_v3 = vld [vmem:[%s2761_s3 + $0x8] sm:$0xff]   ;;  %s2312_s24 = scalar_lea.vmem %s2758_s0, %s1906_s19  ;;  %v2201_v23 = vld [vmem:[%s2761_s3] sm:$0xff]   ;;  %s2438_s17 = scalar_lea.vmem %s2765_s7, %s2431_s14 }
   0xf   : > { %2062 = vmatprep.subr.bf16.mxu0 %v2197_v1  ;;  %2169 = vmatprep.subr.bf16.mxu1 %v2197_v1  ;;  %v420_v4 = vld [vmem:[%s2312_s24] sm:$0xff]  ;;  %v421_v5 = vld [vmem:[%s2312_s24 + $0x8] sm:$0xff]  ;;  %v422_v9 = vld [vmem:[%s2312_s24 + $0x10] sm:$0xff]  ;;  %s2547_s23 = scalar_lea.vmem %s2767_s9, %s2431_s14  ;;  %s2555_s26 = scalar_lea.vmem %s2766_s8, %s2431_s14 }
  0x10   : > { %v436_v6 = vld [vmem:[%s2312_s24 + $0x80] sm:$0xff]  ;;  %v2317_v7 = vpack.c.bf16 %v421_v5, %v420_v4  ;;  %v437_v8 = vld [vmem:[%s2312_s24 + $0x88] sm:$0xff]  ;;  %v423_v10 = vld [vmem:[%s2312_s24 + $0x18] sm:$0xff] }
  0x11   : > { %v2325_v12 = vpack.c.bf16 %v437_v8, %v436_v6  ;;  %v2327_v13 = vpack.c.bf16 %v423_v10, %v422_v9  ;;  %v438_v14 = vld [vmem:[%s2312_s24 + $0x90] sm:$0xff]  ;;  %v439_v15 = vld [vmem:[%s2312_s24 + $0x98] sm:$0xff]  ;;  %v424_v16 = vld [vmem:[%s2312_s24 + $0x20] sm:$0xff] }
  0x12   : > { %2063 = vmatpush3.bf16.msra.mxu0 %v2197_v1  ;;  %2171 = vmatpush3.bf16.msra.mxu1 %v2197_v1  ;;  %v2334_v17 = vpack.c.bf16 %v439_v15, %v438_v14  ;;  %v425_v18 = vld [vmem:[%s2312_s24 + $0x28] sm:$0xff]  ;;  %v440_v19 = vld [vmem:[%s2312_s24 + $0xa0] sm:$0xff]  ;;  %v426_v24 = vld [vmem:[%s2312_s24 + $0x30] sm:$0xff] }
  0x13   : > { %2096 = vmatprep.subr.bf16.mxu1 %v2198_v2  ;;  %2132 = vmatprep.subr.bf16.mxu0 %v2199_v3  ;;  %v441_v20 = vld [vmem:[%s2312_s24 + $0xa8] sm:$0xff]  ;;  %v454_v21 = vpack.c.bf16 %v425_v18, %v424_v16  ;;  %v427_v25 = vld [vmem:[%s2312_s24 + $0x38] sm:$0xff]  ;;  %v442_v26 = vld [vmem:[%s2312_s24 + $0xb0] sm:$0xff] }
  0x14   : > { %2064 = vmatprep.mubr.msk.bf16.mxu0 %vm491_vm0, %v2317_v7  ;;  %2080 = vmatprep.mubr.msk.bf16.mxu1 %vm491_vm0, %v2325_v12  ;;  %v2343_v22 = vpack.c.bf16 %v441_v20, %v440_v19  ;;  %v443_v27 = vld [vmem:[%s2312_s24 + $0xb8] sm:$0xff]  ;;  %v428_v28 = vld [vmem:[%s2312_s24 + $0x40] sm:$0xff]  ;;  %v429_v29 = vld [vmem:[%s2312_s24 + $0x48] sm:$0xff]  ;;  %v455_v32 = vpack.c.bf16 %v427_v25, %v426_v24 }
  0x15   : > { %2065 = vmatmul.mubr.msk.bf16.vlgmr.msra.gmra.mxu0 %vm491_vm0, %v2327_v13  ;;  %2081 = vmatmul.mubr.msk.bf16.vlgmr.msra.gmra.mxu1 %vm491_vm0, %v2334_v17  ;;  %v444_v30 = vld [vmem:[%s2312_s24 + $0xc0] sm:$0xff]  ;;  %v445_v31 = vld [vmem:[%s2312_s24 + $0xc8] sm:$0xff]  ;;  %v463_v33 = vpack.c.bf16 %v443_v27, %v442_v26  ;;  %v456_v34 = vpack.c.bf16 %v429_v29, %v428_v28  ;;  %v430_v36 = vld [vmem:[%s2312_s24 + $0x50] sm:$0xff] }
  0x16   : > { %2133 = vmatpush3.bf16.msra.mxu0 %v2199_v3  ;;  %2097 = vmatpush3.bf16.msra.mxu1 %v2198_v2  ;;  %v464_v35 = vpack.c.bf16 %v445_v31, %v444_v30  ;;  %v431_v37 = vld [vmem:[%s2312_s24 + $0x58] sm:$0xff]  ;;  %v446_v38 = vld [vmem:[%s2312_s24 + $0xd0] sm:$0xff]  ;;  %v432_v40 = vld [vmem:[%s2312_s24 + $0x60] sm:$0xff] }
  0x17   : > { %2068 = vmatprep.mubr.msk.bf16.mxu0 %vm491_vm0, %v454_v21  ;;  %2084 = vmatprep.mubr.msk.bf16.mxu1 %vm491_vm0, %v2343_v22  ;;  %v447_v39 = vld [vmem:[%s2312_s24 + $0xd8] sm:$0xff]  ;;  %v433_v41 = vld [vmem:[%s2312_s24 + $0x68] sm:$0xff]  ;;  %v448_v42 = vld [vmem:[%s2312_s24 + $0xe0] sm:$0xff]  ;;  %v457_v44 = vpack.c.bf16 %v431_v37, %v430_v36 }
  0x18   : > { %2098 = vmatprep.subr.bf16.mxu1 %v2200_v11  ;;  %2134 = vmatprep.subr.bf16.mxu0 %v2201_v23  ;;  %v449_v43 = vld [vmem:[%s2312_s24 + $0xe8] sm:$0xff]  ;;  %v465_v45 = vpack.c.bf16 %v447_v39, %v446_v38  ;;  %v458_v46 = vpack.c.bf16 %v433_v41, %v432_v40  ;;  %v434_v48 = vld [vmem:[%s2312_s24 + $0x70] sm:$0xff]  ;;  %v435_v49 = vld [vmem:[%s2312_s24 + $0x78] sm:$0xff] }
  0x19   : > { %v466_v47 = vpack.c.bf16 %v449_v43, %v448_v42  ;;  %v450_v50 = vld [vmem:[%s2312_s24 + $0xf0] sm:$0xff]  ;;  %v451_v51 = vld [vmem:[%s2312_s24 + $0xf8] sm:$0xff]  ;;  %v459_v52 = vpack.c.bf16 %v435_v49, %v434_v48  ;;  %v2428_v54 = vld [vmem:[%s2762_s4] ss:$0 sm:$0xff] }
  0x1a   : > { %2135 = vmatpush3.bf16.msra.mxu0 %v2201_v23  ;;  %2099 = vmatpush3.bf16.msra.mxu1 %v2200_v11  ;;  %v467_v53 = vpack.c.bf16 %v451_v51, %v450_v50 }
  0x1d   : > { %2069 = vmatmul.mubr.msk.bf16.gmra.mxu0 %vm491_vm0, %v455_v32  ;;  %2085 = vmatmul.mubr.msk.bf16.gmra.mxu1 %vm491_vm0, %v463_v33 }
  0x1e   : > { %2072 = vmatprep.mubr.msk.bf16.mxu0 %vm491_vm0, %v456_v34  ;;  %2088 = vmatprep.mubr.msk.bf16.mxu1 %vm491_vm0, %v464_v35 }
  0x25   : > { %2073 = vmatmul.mubr.msk.bf16.gmra.mxu0 %vm491_vm0, %v457_v44  ;;  %2089 = vmatmul.mubr.msk.bf16.gmra.mxu1 %vm491_vm0, %v465_v45 }
  0x26   : > { %2076 = vmatprep.mubr.msk.bf16.mxu0 %vm491_vm0, %v458_v46  ;;  %2092 = vmatprep.mubr.msk.bf16.mxu1 %vm491_vm0, %v466_v47 }
  0x2d   : > { %2077 = vmatmul.mubr.msk.bf16.gmra.mxu0 %vm491_vm0, %v459_v52  ;;  %2093 = vmatmul.mubr.msk.bf16.gmra.mxu1 %vm491_vm0, %v467_v53 }
  0x2e   : > { %2136 = vmatprep.mubr.msk.bf16.mxu0 %vm491_vm0, %v2317_v7  ;;  %2100 = vmatprep.mubr.msk.bf16.mxu1 %vm491_vm0, %v2317_v7 }
  0x35   : > { %2137 = vmatmul.mubr.msk.bf16.vlgmr.msra.gmra.mxu0 %vm491_vm0, %v2327_v13  ;;  %2101 = vmatmul.mubr.msk.bf16.vlgmr.msra.gmra.mxu1 %vm491_vm0, %v2327_v13 }
  0x36   : > { %2140 = vmatprep.mubr.msk.bf16.mxu0 %vm491_vm0, %v454_v21  ;;  %2104 = vmatprep.mubr.msk.bf16.mxu1 %vm491_vm0, %v454_v21 }
  0x3d   : > { %2141 = vmatmul.mubr.msk.bf16.gmra.mxu0 %vm491_vm0, %v455_v32  ;;  %2105 = vmatmul.mubr.msk.bf16.gmra.mxu1 %vm491_vm0, %v455_v32 }
  0x3e   : > { %2144 = vmatprep.mubr.msk.bf16.mxu0 %vm491_vm0, %v456_v34  ;;  %2108 = vmatprep.mubr.msk.bf16.mxu1 %vm491_vm0, %v456_v34 }
  0x45   : > { %2145 = vmatmul.mubr.msk.bf16.gmra.mxu0 %vm491_vm0, %v457_v44  ;;  %2109 = vmatmul.mubr.msk.bf16.gmra.mxu1 %vm491_vm0, %v457_v44 }
  0x46   : > { %2148 = vmatprep.mubr.msk.bf16.mxu0 %vm491_vm0, %v458_v46  ;;  %2112 = vmatprep.mubr.msk.bf16.mxu1 %vm491_vm0, %v458_v46 }
  0x4d   : > { %2149 = vmatmul.mubr.msk.bf16.gmra.mxu0 %vm491_vm0, %v459_v52  ;;  %2113 = vmatmul.mubr.msk.bf16.gmra.mxu1 %vm491_vm0, %v459_v52 }
  0x4e   : > { %2152 = vmatprep.mubr.msk.bf16.mxu0 %vm491_vm0, %v2325_v12  ;;  %2116 = vmatprep.mubr.msk.bf16.mxu1 %vm491_vm0, %v2325_v12 }
  0x55   : > { %2153 = vmatmul.mubr.msk.bf16.gmra.mxu0 %vm491_vm0, %v2334_v17  ;;  %2117 = vmatmul.mubr.msk.bf16.gmra.mxu1 %vm491_vm0, %v2334_v17 }
  0x56   : > { %2156 = vmatprep.mubr.msk.bf16.mxu0 %vm491_vm0, %v2343_v22  ;;  %2120 = vmatprep.mubr.msk.bf16.mxu1 %vm491_vm0, %v2343_v22 }
  0x5d   : > { %2157 = vmatmul.mubr.msk.bf16.gmra.mxu0 %vm491_vm0, %v463_v33  ;;  %2121 = vmatmul.mubr.msk.bf16.gmra.mxu1 %vm491_vm0, %v463_v33 }
  0x5e   : > { %2160 = vmatprep.mubr.msk.bf16.mxu0 %vm491_vm0, %v464_v35  ;;  %2124 = vmatprep.mubr.msk.bf16.mxu1 %vm491_vm0, %v464_v35 }
  0x65   : > { %2161 = vmatmul.mubr.msk.bf16.gmra.mxu0 %vm491_vm0, %v465_v45  ;;  %2125 = vmatmul.mubr.msk.bf16.gmra.mxu1 %vm491_vm0, %v465_v45 }
  0x66   : > { %2164 = vmatprep.mubr.msk.bf16.mxu0 %vm491_vm0, %v466_v47  ;;  %2128 = vmatprep.mubr.msk.bf16.mxu1 %vm491_vm0, %v466_v47 }
  0x6d   : > { %2165 = vmatmul.mubr.msk.bf16.gmra.mxu0 %vm491_vm0, %v467_v53  ;;  %2129 = vmatmul.mubr.msk.bf16.gmra.mxu1 %vm491_vm0, %v467_v53 }
  0xd5   : > { %v2066_v55 = vpop.f32.mrf.mxu0  ;;  %v2082_v57 = vpop.f32.mrf.mxu1 }
  0xd6   : > { %v583_v56 = vadd.f32 %v2066_v55, %v2428_v54  ;;  %v647_v58 = vadd.f32 %v2082_v57, %v2428_v54 }
  0xd7   : > { %v574_v59 = vpop.f32.mrf.mxu0  ;;  %v638_v62 = vpop.f32.mrf.mxu1 }
  0xd8   : > { %v1912_v60 = vpack.c.bf16 %v583_v56, %v583_v56  ;;  %v575_v61 = vadd.f32 %v2428_v54, %v574_v59  ;;  %v1928_v63 = vpack.c.bf16 %v647_v58, %v647_v58  ;;  %v639_v0 = vadd.f32 %v2428_v54, %v638_v62 }
  0xd9   : > { %v2067_v1 = vpop.f32.mrf.mxu0  ;;  %v2083_v4 = vpop.f32.mrf.mxu1 }
  0xda   : > { %1200 = vst.msk [vmem:[%s2438_s17 + $0x8] sm:$0xf] %vm1197_vm1, %v1912_v60  ;;  %v1910_v2 = vpack.c.bf16 %v575_v61, %v575_v61  ;;  %v586_v3 = vadd.f32 %v2067_v1, %v2428_v54  ;;  %1216 = vst.msk [vmem:[%s2438_s17 + $0x48] sm:$0xf] %vm1197_vm1, %v1928_v63  ;;  %v1926_v5 = vpack.c.bf16 %v639_v0, %v639_v0 }
  0xdb   : > { %v650_v6 = vadd.f32 %v2083_v4, %v2428_v54  ;;  %v577_v7 = vpop.f32.mrf.mxu0  ;;  %v641_v10 = vpop.f32.mrf.mxu1 }
  0xdc   : > { %1198 = vst.msk [vmem:[%s2438_s17] sm:$0xf] %vm1197_vm1, %v1910_v2  ;;  %v1913_v8 = vpack.c.bf16 %v586_v3, %v586_v3  ;;  %v578_v9 = vadd.f32 %v2428_v54, %v577_v7  ;;  %1214 = vst.msk [vmem:[%s2438_s17 + $0x40] sm:$0xf] %vm1197_vm1, %v1926_v5  ;;  %v642_v12 = vadd.f32 %v2428_v54, %v641_v10 }
  0xdd   : > { %v1929_v11 = vpack.c.bf16 %v650_v6, %v650_v6  ;;  %v2070_v13 = vpop.f32.mrf.mxu0  ;;  %v2086_v16 = vpop.f32.mrf.mxu1 }
  0xde   : > { %1201 = vst.msk [vmem:[%s2438_s17 + $0xc] sm:$0xf] %vm1197_vm1, %v1913_v8  ;;  %v1911_v14 = vpack.c.bf16 %v578_v9, %v578_v9  ;;  %v599_v15 = vadd.f32 %v2070_v13, %v2428_v54  ;;  %v1927_v17 = vpack.c.bf16 %v642_v12, %v642_v12  ;;  %v663_v18 = vadd.f32 %v2086_v16, %v2428_v54 }
  0xdf   : > { %1217 = vst.msk [vmem:[%s2438_s17 + $0x4c] sm:$0xf] %vm1197_vm1, %v1929_v11  ;;  %v590_v19 = vpop.f32.mrf.mxu0  ;;  %v654_v22 = vpop.f32.mrf.mxu1 }
  0xe0   : > { %1199 = vst.msk [vmem:[%s2438_s17 + $0x4] sm:$0xf] %vm1197_vm1, %v1911_v14  ;;  %v1916_v20 = vpack.c.bf16 %v599_v15, %v599_v15  ;;  %v591_v21 = vadd.f32 %v2428_v54, %v590_v19  ;;  %1215 = vst.msk [vmem:[%s2438_s17 + $0x44] sm:$0xf] %vm1197_vm1, %v1927_v17  ;;  %v1932_v23 = vpack.c.bf16 %v663_v18, %v663_v18  ;;  %v2524_v17 = vld [vmem:[%s2764_s6] ss:$0 sm:$0xff] }
  0xe1   : > { %v655_v24 = vadd.f32 %v2428_v54, %v654_v22  ;;  %v2071_v25 = vpop.f32.mrf.mxu0  ;;  %v2087_v28 = vpop.f32.mrf.mxu1 }
  0xe2   : > { %1204 = vst.msk [vmem:[%s2438_s17 + $0x18] sm:$0xf] %vm1197_vm1, %v1916_v20  ;;  %v1914_v26 = vpack.c.bf16 %v591_v21, %v591_v21  ;;  %v602_v27 = vadd.f32 %v2071_v25, %v2428_v54  ;;  %1220 = vst.msk [vmem:[%s2438_s17 + $0x58] sm:$0xf] %vm1197_vm1, %v1932_v23  ;;  %v666_v30 = vadd.f32 %v2087_v28, %v2428_v54  ;;  %v2532_v21 = vld [vmem:[%s2763_s5] ss:$0 sm:$0xff] }
  0xe3   : > { %v1930_v29 = vpack.c.bf16 %v655_v24, %v655_v24  ;;  %v593_v31 = vpop.f32.mrf.mxu0  ;;  %v657_v34 = vpop.f32.mrf.mxu1 }
  0xe4   : > { %1202 = vst.msk [vmem:[%s2438_s17 + $0x10] sm:$0xf] %vm1197_vm1, %v1914_v26  ;;  %v1917_v32 = vpack.c.bf16 %v602_v27, %v602_v27  ;;  %v594_v33 = vadd.f32 %v2428_v54, %v593_v31  ;;  %v1933_v35 = vpack.c.bf16 %v666_v30, %v666_v30  ;;  %v658_v36 = vadd.f32 %v2428_v54, %v657_v34 }
  0xe5   : > { %1218 = vst.msk [vmem:[%s2438_s17 + $0x50] sm:$0xf] %vm1197_vm1, %v1930_v29  ;;  %v2074_v37 = vpop.f32.mrf.mxu0  ;;  %v2090_v40 = vpop.f32.mrf.mxu1 }
  0xe6   : > { %1205 = vst.msk [vmem:[%s2438_s17 + $0x1c] sm:$0xf] %vm1197_vm1, %v1917_v32  ;;  %v1915_v38 = vpack.c.bf16 %v594_v33, %v594_v33  ;;  %v615_v39 = vadd.f32 %v2074_v37, %v2428_v54  ;;  %1221 = vst.msk [vmem:[%s2438_s17 + $0x5c] sm:$0xf] %vm1197_vm1, %v1933_v35  ;;  %v1931_v41 = vpack.c.bf16 %v658_v36, %v658_v36 }
  0xe7   : > { %v679_v42 = vadd.f32 %v2090_v40, %v2428_v54  ;;  %v606_v43 = vpop.f32.mrf.mxu0  ;;  %v670_v46 = vpop.f32.mrf.mxu1 }
  0xe8   : > { %1203 = vst.msk [vmem:[%s2438_s17 + $0x14] sm:$0xf] %vm1197_vm1, %v1915_v38  ;;  %v1920_v44 = vpack.c.bf16 %v615_v39, %v615_v39  ;;  %v607_v45 = vadd.f32 %v2428_v54, %v606_v43  ;;  %1219 = vst.msk [vmem:[%s2438_s17 + $0x54] sm:$0xf] %vm1197_vm1, %v1931_v41  ;;  %v671_v48 = vadd.f32 %v2428_v54, %v670_v46 }
  0xe9   : > { %v1936_v47 = vpack.c.bf16 %v679_v42, %v679_v42  ;;  %v2075_v49 = vpop.f32.mrf.mxu0  ;;  %v2091_v52 = vpop.f32.mrf.mxu1 }
  0xea   : > { %1208 = vst.msk [vmem:[%s2438_s17 + $0x28] sm:$0xf] %vm1197_vm1, %v1920_v44  ;;  %v1918_v50 = vpack.c.bf16 %v607_v45, %v607_v45  ;;  %v618_v51 = vadd.f32 %v2075_v49, %v2428_v54  ;;  %v1934_v53 = vpack.c.bf16 %v671_v48, %v671_v48  ;;  %v682_v55 = vadd.f32 %v2091_v52, %v2428_v54 }
  0xeb   : > { %1224 = vst.msk [vmem:[%s2438_s17 + $0x68] sm:$0xf] %vm1197_vm1, %v1936_v47  ;;  %v609_v56 = vpop.f32.mrf.mxu0  ;;  %v673_v59 = vpop.f32.mrf.mxu1 }
  0xec   : > { %1206 = vst.msk [vmem:[%s2438_s17 + $0x20] sm:$0xf] %vm1197_vm1, %v1918_v50  ;;  %v1921_v57 = vpack.c.bf16 %v618_v51, %v618_v51  ;;  %v610_v58 = vadd.f32 %v2428_v54, %v609_v56  ;;  %1222 = vst.msk [vmem:[%s2438_s17 + $0x60] sm:$0xf] %vm1197_vm1, %v1934_v53  ;;  %v1937_v60 = vpack.c.bf16 %v682_v55, %v682_v55 }
  0xed   : > { %v674_v61 = vadd.f32 %v2428_v54, %v673_v59  ;;  %v2078_v62 = vpop.f32.mrf.mxu0  ;;  %v2094_v1 = vpop.f32.mrf.mxu1 }
  0xee   : > { %1209 = vst.msk [vmem:[%s2438_s17 + $0x2c] sm:$0xf] %vm1197_vm1, %v1921_v57  ;;  %v1919_v63 = vpack.c.bf16 %v610_v58, %v610_v58  ;;  %v631_v0 = vadd.f32 %v2078_v62, %v2428_v54  ;;  %1225 = vst.msk [vmem:[%s2438_s17 + $0x6c] sm:$0xf] %vm1197_vm1, %v1937_v60  ;;  %v695_v3 = vadd.f32 %v2094_v1, %v2428_v54 }
  0xef   : > { %v1935_v2 = vpack.c.bf16 %v674_v61, %v674_v61  ;;  %v622_v4 = vpop.f32.mrf.mxu0  ;;  %v686_v7 = vpop.f32.mrf.mxu1 }
  0xf0   : > { %1207 = vst.msk [vmem:[%s2438_s17 + $0x24] sm:$0xf] %vm1197_vm1, %v1919_v63  ;;  %v1924_v5 = vpack.c.bf16 %v631_v0, %v631_v0  ;;  %v623_v6 = vadd.f32 %v2428_v54, %v622_v4  ;;  %v1940_v8 = vpack.c.bf16 %v695_v3, %v695_v3  ;;  %v687_v9 = vadd.f32 %v2428_v54, %v686_v7 }
  0xf1   : > { %1223 = vst.msk [vmem:[%s2438_s17 + $0x64] sm:$0xf] %vm1197_vm1, %v1935_v2  ;;  %v2079_v10 = vpop.f32.mrf.mxu0  ;;  %v2095_v13 = vpop.f32.mrf.mxu1 }
  0xf2   : > { %1212 = vst.msk [vmem:[%s2438_s17 + $0x38] sm:$0xf] %vm1197_vm1, %v1924_v5  ;;  %v1922_v11 = vpack.c.bf16 %v623_v6, %v623_v6  ;;  %v634_v12 = vadd.f32 %v2079_v10, %v2428_v54  ;;  %1228 = vst.msk [vmem:[%s2438_s17 + $0x78] sm:$0xf] %vm1197_vm1, %v1940_v8  ;;  %v1938_v14 = vpack.c.bf16 %v687_v9, %v687_v9 }
  0xf3   : > { %v698_v15 = vadd.f32 %v2095_v13, %v2428_v54  ;;  %v625_v16 = vpop.f32.mrf.mxu0  ;;  %v689_v20 = vpop.f32.mrf.mxu1 }
  0xf4   : > { %1210 = vst.msk [vmem:[%s2438_s17 + $0x30] sm:$0xf] %vm1197_vm1, %v1922_v11  ;;  %v1925_v18 = vpack.c.bf16 %v634_v12, %v634_v12  ;;  %v626_v19 = vadd.f32 %v2428_v54, %v625_v16  ;;  %1226 = vst.msk [vmem:[%s2438_s17 + $0x70] sm:$0xf] %vm1197_vm1, %v1938_v14  ;;  %v690_v23 = vadd.f32 %v2428_v54, %v689_v20 }
  0xf5   : > { %v1941_v22 = vpack.c.bf16 %v698_v15, %v698_v15  ;;  %v2138_v24 = vpop.f32.mrf.mxu0  ;;  %v2102_v26 = vpop.f32.mrf.mxu1 }
  0xf6   : > { %1213 = vst.msk [vmem:[%s2438_s17 + $0x3c] sm:$0xf] %vm1197_vm1, %v1925_v18  ;;  %v1923_v25 = vpack.c.bf16 %v626_v19, %v626_v19  ;;  %v951_v27 = vadd.f32 %v2138_v24, %v2524_v17  ;;  %v1939_v28 = vpack.c.bf16 %v690_v23, %v690_v23  ;;  %v767_v29 = vadd.f32 %v2102_v26, %v2532_v21 }
  0xf7   : > { %1229 = vst.msk [vmem:[%s2438_s17 + $0x7c] sm:$0xf] %vm1197_vm1, %v1941_v22  ;;  %v942_v54 = vpop.f32.mrf.mxu0  ;;  %v758_v31 = vpop.f32.mrf.mxu1 }
  0xf8   : > { %1211 = vst.msk [vmem:[%s2438_s17 + $0x34] sm:$0xf] %vm1197_vm1, %v1923_v25  ;;  %v1976_v30 = vpack.c.bf16 %v951_v27, %v951_v27  ;;  %v943_v32 = vadd.f32 %v2524_v17, %v942_v54  ;;  %1227 = vst.msk [vmem:[%s2438_s17 + $0x74] sm:$0xf] %vm1197_vm1, %v1939_v28  ;;  %v1944_v33 = vpack.c.bf16 %v767_v29, %v767_v29 }
  0xf9   : > { %v759_v34 = vadd.f32 %v2532_v21, %v758_v31  ;;  %v2139_v35 = vpop.f32.mrf.mxu0  ;;  %v2103_v37 = vpop.f32.mrf.mxu1 }
  0xfa   : > { %1521 = vst.msk [vmem:[%s2547_s23 + $0x8] sm:$0xf] %vm1518_vm2, %v1976_v30  ;;  %v1974_v36 = vpack.c.bf16 %v943_v32, %v943_v32  ;;  %v954_v38 = vadd.f32 %v2139_v35, %v2524_v17  ;;  %v770_v40 = vadd.f32 %v2103_v37, %v2532_v21 }
  0xfb   : > { %1360 = vst.msk [vmem:[%s2555_s26 + $0x8] sm:$0xf] %vm1197_vm1, %v1944_v33  ;;  %v1942_v39 = vpack.c.bf16 %v759_v34, %v759_v34  ;;  %v945_v41 = vpop.f32.mrf.mxu0  ;;  %v761_v43 = vpop.f32.mrf.mxu1 }
  0xfc   : > { %1519 = vst.msk [vmem:[%s2547_s23] sm:$0xf] %vm1518_vm2, %v1974_v36  ;;  %v1977_v42 = vpack.c.bf16 %v954_v38, %v954_v38  ;;  %v946_v44 = vadd.f32 %v2524_v17, %v945_v41  ;;  %v1945_v45 = vpack.c.bf16 %v770_v40, %v770_v40  ;;  %v762_v46 = vadd.f32 %v2532_v21, %v761_v43 }
  0xfd   : > { %1358 = vst.msk [vmem:[%s2555_s26] sm:$0xf] %vm1197_vm1, %v1942_v39  ;;  %v2142_v47 = vpop.f32.mrf.mxu0  ;;  %v2106_v49 = vpop.f32.mrf.mxu1 }
  0xfe   : > { %1522 = vst.msk [vmem:[%s2547_s23 + $0xc] sm:$0xf] %vm1518_vm2, %v1977_v42  ;;  %v1975_v48 = vpack.c.bf16 %v946_v44, %v946_v44  ;;  %v967_v50 = vadd.f32 %v2142_v47, %v2524_v17  ;;  %v1943_v51 = vpack.c.bf16 %v762_v46, %v762_v46  ;;  %v783_v52 = vadd.f32 %v2106_v49, %v2532_v21 }
  0xff   : > { %1361 = vst.msk [vmem:[%s2555_s26 + $0xc] sm:$0xf] %vm1197_vm1, %v1945_v45  ;;  %v958_v53 = vpop.f32.mrf.mxu0  ;;  %v774_v56 = vpop.f32.mrf.mxu1 }
 0x100   : > { %1520 = vst.msk [vmem:[%s2547_s23 + $0x4] sm:$0xf] %vm1518_vm2, %v1975_v48  ;;  %v1980_v55 = vpack.c.bf16 %v967_v50, %v967_v50  ;;  %v959_v57 = vadd.f32 %v2524_v17, %v958_v53  ;;  %v1948_v58 = vpack.c.bf16 %v783_v52, %v783_v52  ;;  %v775_v59 = vadd.f32 %v2532_v21, %v774_v56 }
 0x101   : > { %1359 = vst.msk [vmem:[%s2555_s26 + $0x4] sm:$0xf] %vm1197_vm1, %v1943_v51  ;;  %v2143_v60 = vpop.f32.mrf.mxu0  ;;  %v2107_v62 = vpop.f32.mrf.mxu1 }
 0x102   : > { %1525 = vst.msk [vmem:[%s2547_s23 + $0x18] sm:$0xf] %vm1518_vm2, %v1980_v55  ;;  %v1978_v61 = vpack.c.bf16 %v959_v57, %v959_v57  ;;  %v970_v63 = vadd.f32 %v2143_v60, %v2524_v17  ;;  %v1946_v0 = vpack.c.bf16 %v775_v59, %v775_v59  ;;  %v786_v1 = vadd.f32 %v2107_v62, %v2532_v21 }
 0x103   : > { %1364 = vst.msk [vmem:[%s2555_s26 + $0x18] sm:$0xf] %vm1197_vm1, %v1948_v58  ;;  %v961_v2 = vpop.f32.mrf.mxu0  ;;  %v777_v4 = vpop.f32.mrf.mxu1 }
 0x104   : > { %1523 = vst.msk [vmem:[%s2547_s23 + $0x10] sm:$0xf] %vm1518_vm2, %v1978_v61  ;;  %v1981_v3 = vpack.c.bf16 %v970_v63, %v970_v63  ;;  %v962_v5 = vadd.f32 %v2524_v17, %v961_v2  ;;  %v1949_v6 = vpack.c.bf16 %v786_v1, %v786_v1  ;;  %v778_v7 = vadd.f32 %v2532_v21, %v777_v4 }
 0x105   : > { %1362 = vst.msk [vmem:[%s2555_s26 + $0x10] sm:$0xf] %vm1197_vm1, %v1946_v0  ;;  %v2146_v8 = vpop.f32.mrf.mxu0  ;;  %v2110_v10 = vpop.f32.mrf.mxu1 }
 0x106   : > { %1526 = vst.msk [vmem:[%s2547_s23 + $0x1c] sm:$0xf] %vm1518_vm2, %v1981_v3  ;;  %v1979_v9 = vpack.c.bf16 %v962_v5, %v962_v5  ;;  %v983_v11 = vadd.f32 %v2146_v8, %v2524_v17  ;;  %v1947_v12 = vpack.c.bf16 %v778_v7, %v778_v7  ;;  %v799_v13 = vadd.f32 %v2110_v10, %v2532_v21 }
 0x107   : > { %1365 = vst.msk [vmem:[%s2555_s26 + $0x1c] sm:$0xf] %vm1197_vm1, %v1949_v6  ;;  %v974_v14 = vpop.f32.mrf.mxu0  ;;  %v790_v16 = vpop.f32.mrf.mxu1 }
 0x108   : > { %1524 = vst.msk [vmem:[%s2547_s23 + $0x14] sm:$0xf] %vm1518_vm2, %v1979_v9  ;;  %v1984_v15 = vpack.c.bf16 %v983_v11, %v983_v11  ;;  %v975_v18 = vadd.f32 %v2524_v17, %v974_v14  ;;  %v1952_v19 = vpack.c.bf16 %v799_v13, %v799_v13  ;;  %v791_v20 = vadd.f32 %v2532_v21, %v790_v16 }
 0x109   : > { %1363 = vst.msk [vmem:[%s2555_s26 + $0x14] sm:$0xf] %vm1197_vm1, %v1947_v12  ;;  %v2147_v22 = vpop.f32.mrf.mxu0  ;;  %v2111_v24 = vpop.f32.mrf.mxu1 }
 0x10a   : > { %1529 = vst.msk [vmem:[%s2547_s23 + $0x28] sm:$0xf] %vm1518_vm2, %v1984_v15  ;;  %v1982_v23 = vpack.c.bf16 %v975_v18, %v975_v18  ;;  %v986_v25 = vadd.f32 %v2147_v22, %v2524_v17  ;;  %v1950_v26 = vpack.c.bf16 %v791_v20, %v791_v20  ;;  %v802_v27 = vadd.f32 %v2111_v24, %v2532_v21 }
 0x10b   : > { %1368 = vst.msk [vmem:[%s2555_s26 + $0x28] sm:$0xf] %vm1197_vm1, %v1952_v19  ;;  %v977_v28 = vpop.f32.mrf.mxu0  ;;  %v793_v54 = vpop.f32.mrf.mxu1 }
 0x10c   : > { %1527 = vst.msk [vmem:[%s2547_s23 + $0x20] sm:$0xf] %vm1518_vm2, %v1982_v23  ;;  %v1985_v29 = vpack.c.bf16 %v986_v25, %v986_v25  ;;  %v978_v30 = vadd.f32 %v2524_v17, %v977_v28  ;;  %v1953_v31 = vpack.c.bf16 %v802_v27, %v802_v27  ;;  %v794_v32 = vadd.f32 %v2532_v21, %v793_v54 }
 0x10d   : > { %1366 = vst.msk [vmem:[%s2555_s26 + $0x20] sm:$0xf] %vm1197_vm1, %v1950_v26  ;;  %v2150_v33 = vpop.f32.mrf.mxu0  ;;  %v2114_v35 = vpop.f32.mrf.mxu1 }
 0x10e   : > { %1530 = vst.msk [vmem:[%s2547_s23 + $0x2c] sm:$0xf] %vm1518_vm2, %v1985_v29  ;;  %v1983_v34 = vpack.c.bf16 %v978_v30, %v978_v30  ;;  %v999_v36 = vadd.f32 %v2150_v33, %v2524_v17  ;;  %v1951_v37 = vpack.c.bf16 %v794_v32, %v794_v32  ;;  %v815_v38 = vadd.f32 %v2114_v35, %v2532_v21 }
 0x10f   : > { %1369 = vst.msk [vmem:[%s2555_s26 + $0x2c] sm:$0xf] %vm1197_vm1, %v1953_v31  ;;  %v990_v39 = vpop.f32.mrf.mxu0  ;;  %v806_v41 = vpop.f32.mrf.mxu1 }
 0x110   : > { %1528 = vst.msk [vmem:[%s2547_s23 + $0x24] sm:$0xf] %vm1518_vm2, %v1983_v34  ;;  %v1988_v40 = vpack.c.bf16 %v999_v36, %v999_v36  ;;  %v991_v42 = vadd.f32 %v2524_v17, %v990_v39  ;;  %v1956_v43 = vpack.c.bf16 %v815_v38, %v815_v38  ;;  %v807_v44 = vadd.f32 %v2532_v21, %v806_v41 }
 0x111   : > { %1367 = vst.msk [vmem:[%s2555_s26 + $0x24] sm:$0xf] %vm1197_vm1, %v1951_v37  ;;  %v2151_v45 = vpop.f32.mrf.mxu0  ;;  %v2115_v47 = vpop.f32.mrf.mxu1 }
 0x112   : > { %1533 = vst.msk [vmem:[%s2547_s23 + $0x38] sm:$0xf] %vm1518_vm2, %v1988_v40  ;;  %v1986_v46 = vpack.c.bf16 %v991_v42, %v991_v42  ;;  %v1002_v48 = vadd.f32 %v2151_v45, %v2524_v17  ;;  %v1954_v49 = vpack.c.bf16 %v807_v44, %v807_v44  ;;  %v818_v50 = vadd.f32 %v2115_v47, %v2532_v21 }
 0x113   : > { %1372 = vst.msk [vmem:[%s2555_s26 + $0x38] sm:$0xf] %vm1197_vm1, %v1956_v43  ;;  %v993_v51 = vpop.f32.mrf.mxu0  ;;  %v809_v53 = vpop.f32.mrf.mxu1 }
 0x114   : > { %1531 = vst.msk [vmem:[%s2547_s23 + $0x30] sm:$0xf] %vm1518_vm2, %v1986_v46  ;;  %v1989_v52 = vpack.c.bf16 %v1002_v48, %v1002_v48  ;;  %v994_v55 = vadd.f32 %v2524_v17, %v993_v51  ;;  %v1957_v56 = vpack.c.bf16 %v818_v50, %v818_v50  ;;  %v810_v57 = vadd.f32 %v2532_v21, %v809_v53 }
 0x115   : > { %1370 = vst.msk [vmem:[%s2555_s26 + $0x30] sm:$0xf] %vm1197_vm1, %v1954_v49  ;;  %v2154_v58 = vpop.f32.mrf.mxu0  ;;  %v2118_v60 = vpop.f32.mrf.mxu1 }
 0x116   : > { %1534 = vst.msk [vmem:[%s2547_s23 + $0x3c] sm:$0xf] %vm1518_vm2, %v1989_v52  ;;  %v1987_v59 = vpack.c.bf16 %v994_v55, %v994_v55  ;;  %v1015_v61 = vadd.f32 %v2154_v58, %v2524_v17  ;;  %v1955_v62 = vpack.c.bf16 %v810_v57, %v810_v57  ;;  %v831_v63 = vadd.f32 %v2118_v60, %v2532_v21 }
 0x117   : > { %1373 = vst.msk [vmem:[%s2555_s26 + $0x3c] sm:$0xf] %vm1197_vm1, %v1957_v56  ;;  %v1006_v0 = vpop.f32.mrf.mxu0  ;;  %v822_v2 = vpop.f32.mrf.mxu1 }
 0x118   : > { %1532 = vst.msk [vmem:[%s2547_s23 + $0x34] sm:$0xf] %vm1518_vm2, %v1987_v59  ;;  %v1992_v1 = vpack.c.bf16 %v1015_v61, %v1015_v61  ;;  %v1007_v3 = vadd.f32 %v2524_v17, %v1006_v0  ;;  %v1960_v4 = vpack.c.bf16 %v831_v63, %v831_v63  ;;  %v823_v5 = vadd.f32 %v2532_v21, %v822_v2 }
 0x119   : > { %1371 = vst.msk [vmem:[%s2555_s26 + $0x34] sm:$0xf] %vm1197_vm1, %v1955_v62  ;;  %v2155_v6 = vpop.f32.mrf.mxu0  ;;  %v2119_v8 = vpop.f32.mrf.mxu1 }
 0x11a   : > { %1537 = vst.msk [vmem:[%s2547_s23 + $0x48] sm:$0xf] %vm1518_vm2, %v1992_v1  ;;  %v1990_v7 = vpack.c.bf16 %v1007_v3, %v1007_v3  ;;  %v1018_v9 = vadd.f32 %v2155_v6, %v2524_v17  ;;  %v1958_v10 = vpack.c.bf16 %v823_v5, %v823_v5  ;;  %v834_v11 = vadd.f32 %v2119_v8, %v2532_v21 }
 0x11b   : > { %1376 = vst.msk [vmem:[%s2555_s26 + $0x48] sm:$0xf] %vm1197_vm1, %v1960_v4  ;;  %v1009_v12 = vpop.f32.mrf.mxu0  ;;  %v825_v14 = vpop.f32.mrf.mxu1 }
 0x11c   : > { %1535 = vst.msk [vmem:[%s2547_s23 + $0x40] sm:$0xf] %vm1518_vm2, %v1990_v7  ;;  %v1993_v13 = vpack.c.bf16 %v1018_v9, %v1018_v9  ;;  %v1010_v15 = vadd.f32 %v2524_v17, %v1009_v12  ;;  %v1961_v16 = vpack.c.bf16 %v834_v11, %v834_v11  ;;  %v826_v18 = vadd.f32 %v2532_v21, %v825_v14 }
 0x11d   : > { %1374 = vst.msk [vmem:[%s2555_s26 + $0x40] sm:$0xf] %vm1197_vm1, %v1958_v10  ;;  %v2158_v19 = vpop.f32.mrf.mxu0  ;;  %v2122_v22 = vpop.f32.mrf.mxu1 }
 0x11e   : > { %1538 = vst.msk [vmem:[%s2547_s23 + $0x4c] sm:$0xf] %vm1518_vm2, %v1993_v13  ;;  %v1991_v20 = vpack.c.bf16 %v1010_v15, %v1010_v15  ;;  %v1031_v23 = vadd.f32 %v2158_v19, %v2524_v17  ;;  %v1959_v24 = vpack.c.bf16 %v826_v18, %v826_v18  ;;  %v847_v25 = vadd.f32 %v2122_v22, %v2532_v21 }
 0x11f   : > { %1377 = vst.msk [vmem:[%s2555_s26 + $0x4c] sm:$0xf] %vm1197_vm1, %v1961_v16  ;;  %v1022_v26 = vpop.f32.mrf.mxu0  ;;  %v838_v28 = vpop.f32.mrf.mxu1 }
 0x120   : > { %1536 = vst.msk [vmem:[%s2547_s23 + $0x44] sm:$0xf] %vm1518_vm2, %v1991_v20  ;;  %v1996_v27 = vpack.c.bf16 %v1031_v23, %v1031_v23  ;;  %v1023_v29 = vadd.f32 %v2524_v17, %v1022_v26  ;;  %v1964_v54 = vpack.c.bf16 %v847_v25, %v847_v25  ;;  %v839_v30 = vadd.f32 %v2532_v21, %v838_v28 }
 0x121   : > { %1375 = vst.msk [vmem:[%s2555_s26 + $0x44] sm:$0xf] %vm1197_vm1, %v1959_v24  ;;  %v2159_v31 = vpop.f32.mrf.mxu0  ;;  %v2123_v33 = vpop.f32.mrf.mxu1 }
 0x122   : > { %1541 = vst.msk [vmem:[%s2547_s23 + $0x58] sm:$0xf] %vm1518_vm2, %v1996_v27  ;;  %v1994_v32 = vpack.c.bf16 %v1023_v29, %v1023_v29  ;;  %v1034_v34 = vadd.f32 %v2159_v31, %v2524_v17  ;;  %v1962_v35 = vpack.c.bf16 %v839_v30, %v839_v30  ;;  %v850_v36 = vadd.f32 %v2123_v33, %v2532_v21 }
 0x123   : > { %1380 = vst.msk [vmem:[%s2555_s26 + $0x58] sm:$0xf] %vm1197_vm1, %v1964_v54  ;;  %v1025_v37 = vpop.f32.mrf.mxu0  ;;  %v841_v39 = vpop.f32.mrf.mxu1 }
 0x124   : > { %1539 = vst.msk [vmem:[%s2547_s23 + $0x50] sm:$0xf] %vm1518_vm2, %v1994_v32  ;;  %v1997_v38 = vpack.c.bf16 %v1034_v34, %v1034_v34  ;;  %v1026_v40 = vadd.f32 %v2524_v17, %v1025_v37  ;;  %v1965_v41 = vpack.c.bf16 %v850_v36, %v850_v36  ;;  %v842_v42 = vadd.f32 %v2532_v21, %v841_v39 }
 0x125   : > { %1378 = vst.msk [vmem:[%s2555_s26 + $0x50] sm:$0xf] %vm1197_vm1, %v1962_v35  ;;  %v2162_v43 = vpop.f32.mrf.mxu0  ;;  %v2126_v45 = vpop.f32.mrf.mxu1 }
 0x126   : > { %1542 = vst.msk [vmem:[%s2547_s23 + $0x5c] sm:$0xf] %vm1518_vm2, %v1997_v38  ;;  %v1995_v44 = vpack.c.bf16 %v1026_v40, %v1026_v40  ;;  %v1047_v46 = vadd.f32 %v2162_v43, %v2524_v17  ;;  %v1963_v47 = vpack.c.bf16 %v842_v42, %v842_v42  ;;  %v863_v48 = vadd.f32 %v2126_v45, %v2532_v21 }
 0x127   : > { %1381 = vst.msk [vmem:[%s2555_s26 + $0x5c] sm:$0xf] %vm1197_vm1, %v1965_v41  ;;  %v1038_v49 = vpop.f32.mrf.mxu0  ;;  %v854_v51 = vpop.f32.mrf.mxu1 }
 0x128   : > { %1540 = vst.msk [vmem:[%s2547_s23 + $0x54] sm:$0xf] %vm1518_vm2, %v1995_v44  ;;  %v2000_v50 = vpack.c.bf16 %v1047_v46, %v1047_v46  ;;  %v1039_v52 = vadd.f32 %v2524_v17, %v1038_v49  ;;  %v1968_v53 = vpack.c.bf16 %v863_v48, %v863_v48  ;;  %v855_v55 = vadd.f32 %v2532_v21, %v854_v51 }
 0x129   : > { %1379 = vst.msk [vmem:[%s2555_s26 + $0x54] sm:$0xf] %vm1197_vm1, %v1963_v47  ;;  %v2163_v56 = vpop.f32.mrf.mxu0  ;;  %v2127_v58 = vpop.f32.mrf.mxu1 }
 0x12a   : > { %1545 = vst.msk [vmem:[%s2547_s23 + $0x68] sm:$0xf] %vm1518_vm2, %v2000_v50  ;;  %v1998_v57 = vpack.c.bf16 %v1039_v52, %v1039_v52  ;;  %v1050_v59 = vadd.f32 %v2163_v56, %v2524_v17  ;;  %v1966_v60 = vpack.c.bf16 %v855_v55, %v855_v55  ;;  %v866_v61 = vadd.f32 %v2127_v58, %v2532_v21 }
 0x12b   : > { %1384 = vst.msk [vmem:[%s2555_s26 + $0x68] sm:$0xf] %vm1197_vm1, %v1968_v53  ;;  %v1041_v62 = vpop.f32.mrf.mxu0  ;;  %v857_v0 = vpop.f32.mrf.mxu1 }
 0x12c   : > { %1543 = vst.msk [vmem:[%s2547_s23 + $0x60] sm:$0xf] %vm1518_vm2, %v1998_v57  ;;  %v2001_v63 = vpack.c.bf16 %v1050_v59, %v1050_v59  ;;  %v1042_v1 = vadd.f32 %v2524_v17, %v1041_v62  ;;  %v1969_v2 = vpack.c.bf16 %v866_v61, %v866_v61  ;;  %v858_v3 = vadd.f32 %v2532_v21, %v857_v0 }
 0x12d   : > { %1382 = vst.msk [vmem:[%s2555_s26 + $0x60] sm:$0xf] %vm1197_vm1, %v1966_v60  ;;  %v2166_v4 = vpop.f32.mrf.mxu0  ;;  %v2130_v6 = vpop.f32.mrf.mxu1 }
 0x12e   : > { %1546 = vst.msk [vmem:[%s2547_s23 + $0x6c] sm:$0xf] %vm1518_vm2, %v2001_v63  ;;  %v1999_v5 = vpack.c.bf16 %v1042_v1, %v1042_v1  ;;  %v1063_v7 = vadd.f32 %v2166_v4, %v2524_v17  ;;  %v1967_v8 = vpack.c.bf16 %v858_v3, %v858_v3  ;;  %v879_v9 = vadd.f32 %v2130_v6, %v2532_v21 }
 0x12f   : > { %1385 = vst.msk [vmem:[%s2555_s26 + $0x6c] sm:$0xf] %vm1197_vm1, %v1969_v2  ;;  %v1054_v10 = vpop.f32.mrf.mxu0  ;;  %v870_v12 = vpop.f32.mrf.mxu1 }
 0x130   : > { %1544 = vst.msk [vmem:[%s2547_s23 + $0x64] sm:$0xf] %vm1518_vm2, %v1999_v5  ;;  %v2004_v11 = vpack.c.bf16 %v1063_v7, %v1063_v7  ;;  %v1055_v13 = vadd.f32 %v2524_v17, %v1054_v10  ;;  %v1972_v14 = vpack.c.bf16 %v879_v9, %v879_v9  ;;  %v871_v15 = vadd.f32 %v2532_v21, %v870_v12 }
 0x131   : > { %1383 = vst.msk [vmem:[%s2555_s26 + $0x64] sm:$0xf] %vm1197_vm1, %v1967_v8  ;;  %v2167_v16 = vpop.f32.mrf.mxu0  ;;  %v2131_v19 = vpop.f32.mrf.mxu1 }
 0x132   : > { %1549 = vst.msk [vmem:[%s2547_s23 + $0x78] sm:$0xf] %vm1518_vm2, %v2004_v11  ;;  %v2002_v18 = vpack.c.bf16 %v1055_v13, %v1055_v13  ;;  %v1066_v20 = vadd.f32 %v2167_v16, %v2524_v17  ;;  %v1970_v22 = vpack.c.bf16 %v871_v15, %v871_v15  ;;  %v882_v23 = vadd.f32 %v2131_v19, %v2532_v21 }
 0x133   : > { %1388 = vst.msk [vmem:[%s2555_s26 + $0x78] sm:$0xf] %vm1197_vm1, %v1972_v14  ;;  %v1057_v24 = vpop.f32.mrf.mxu0  ;;  %v873_v26 = vpop.f32.mrf.mxu1 }
 0x134   : > { %1547 = vst.msk [vmem:[%s2547_s23 + $0x70] sm:$0xf] %vm1518_vm2, %v2002_v18  ;;  %v2005_v25 = vpack.c.bf16 %v1066_v20, %v1066_v20  ;;  %v1058_v27 = vadd.f32 %v2524_v17, %v1057_v24  ;;  %v1973_v28 = vpack.c.bf16 %v882_v23, %v882_v23  ;;  %v874_v29 = vadd.f32 %v2532_v21, %v873_v26 }
 0x135   : > { %1386 = vst.msk [vmem:[%s2555_s26 + $0x70] sm:$0xf] %vm1197_vm1, %v1970_v22 }
 0x136   : > { %1550 = vst.msk [vmem:[%s2547_s23 + $0x7c] sm:$0xf] %vm1518_vm2, %v2005_v25  ;;  %v2003_v54 = vpack.c.bf16 %v1058_v27, %v1058_v27  ;;  %v1971_v30 = vpack.c.bf16 %v874_v29, %v874_v29 }
 0x137   : > { %1389 = vst.msk [vmem:[%s2555_s26 + $0x7c] sm:$0xf] %vm1197_vm1, %v1973_v28 }
 0x138   : > { %1548 = vst.msk [vmem:[%s2547_s23 + $0x74] sm:$0xf] %vm1518_vm2, %v2003_v54 }
 0x139   : > { %1387 = vst.msk [vmem:[%s2555_s26 + $0x74] sm:$0xf] %vm1197_vm1, %v1971_v30 }
 0x13a PF: > { %s20_s11 = sadd.s32 1, %s2224_s11   ;;  %s2768_s30 = smov %s2220_s10 }
 0x13b   : > { %p17_p5 = scmp.ge.s32.totalorder %s20_s11, 4   ;;  %s2769_s10 = smov %s2771_s12 }
 0x13d   :  { %19 = sbr.rel (!%p17_p5) target bundleno = 2 (0x2), region = 102 }

</bundles_post_ra>
